<compile_context>
chip_gen: v7x
topology: tpu7x:2x2x1
jax: 0.10.0
libtpu: 0.0.40
codegen_flags: <defaults>
</compile_context>

<pallas_src>
import math

import jax
import jax.numpy as jnp
from jax.experimental import pallas as pl
from jax.experimental.pallas import tpu as pltpu

_LANE = 128


def _round_up(x: int, m: int) -> int:
    return (x + m - 1) // m * m


def _mlp_kernel(x_ref, w1_ref, b1_ref, w2_ref, b2_ref, o_ref):
    # Fused hot path: two MXU matmuls (bf16 in, f32 acc) + f32 bias/ReLU (VPU).
    x = x_ref[...]                                                 # [TB, D_in] bf16
    h = jnp.dot(x, w1_ref[...], preferred_element_type=jnp.float32)
    h = jnp.maximum(h + b1_ref[...], 0.0)                          # f32 bias + ReLU
    y = jnp.dot(h.astype(w2_ref.dtype), w2_ref[...],
                preferred_element_type=jnp.float32)
    y = jnp.maximum(y + b2_ref[...], 0.0)                          # f32 bias + ReLU
    o_ref[...] = y.astype(o_ref.dtype)                             # lane-dense store


def fashion_mnist_model_v1(x_nchw, w1, b1, w2, b2, *, tile_b: int = 256):
    """Forward pass of FashionMNISTModelv1.

    x_nchw: [B, C, H, W] float32
    w1:     [D_in, hidden]   (transposed PyTorch layout)
    b1:     [hidden]
    w2:     [hidden, D_out]
    b2:     [D_out]
    returns [B, D_out] float32
    """
    B = x_nchw.shape[0]
    d_in = math.prod(x_nchw.shape[1:])          # static Python ints, no device op
    hidden = w1.shape[1]
    d_out = w2.shape[1]

    # Lane-dense padded dims.
    d_in_p = _round_up(d_in, _LANE)
    hid_p = _round_up(hidden, _LANE)
    out_p = _round_up(d_out, _LANE)

    # Batch tile: multiple of 16 (bf16 sublane packing), capped by the batch.
    tile_b = max(16, _round_up(min(tile_b, B), 16))
    B_p = _round_up(B, tile_b)

    x = x_nchw.reshape(B, d_in)                 # nn.Flatten

    # Zero-pad + cast MXU operands to bf16; biases stay f32 (accumulator path).
    x_p = jnp.zeros((B_p, d_in_p), jnp.bfloat16).at[:B, :d_in].set(
        x.astype(jnp.bfloat16))
    w1_p = jnp.zeros((d_in_p, hid_p), jnp.bfloat16).at[:d_in, :hidden].set(
        w1.astype(jnp.bfloat16))
    b1_p = jnp.zeros((1, hid_p), jnp.float32).at[0, :hidden].set(b1)
    w2_p = jnp.zeros((hid_p, out_p), jnp.bfloat16).at[:hidden, :d_out].set(
        w2.astype(jnp.bfloat16))
    b2_p = jnp.zeros((1, out_p), jnp.float32).at[0, :d_out].set(b2)

    grid = (B_p // tile_b,)

    flops = 2 * B_p * (d_in_p * hid_p + hid_p * out_p)
    bytes_accessed = (
        B_p * d_in_p * 2          # x (bf16)
        + d_in_p * hid_p * 2      # w1 (bf16)
        + hid_p * out_p * 2       # w2 (bf16)
        + (hid_p + out_p) * 4     # biases (f32)
        + B_p * out_p * 4         # output (f32)
    )

    out = pl.pallas_call(
        _mlp_kernel,
        out_shape=jax.ShapeDtypeStruct((B_p, out_p), jnp.float32),
        grid_spec=pltpu.PrefetchScalarGridSpec(
            num_scalar_prefetch=0,
            grid=grid,
            in_specs=[
                # x streams per batch tile.
                pl.BlockSpec((tile_b, d_in_p), lambda i: (i, 0)),
                # Weights / biases: same block every step -> VMEM-resident.
                pl.BlockSpec((d_in_p, hid_p), lambda i: (0, 0)),
                pl.BlockSpec((1, hid_p), lambda i: (0, 0)),
                pl.BlockSpec((hid_p, out_p), lambda i: (0, 0)),
                pl.BlockSpec((1, out_p), lambda i: (0, 0)),
            ],
            out_specs=pl.BlockSpec((tile_b, out_p), lambda i: (i, 0)),
        ),
        compiler_params=pltpu.CompilerParams(
            dimension_semantics=("parallel",),      # v7x: shard batch over 2 TCs
            vmem_limit_bytes=32 * 1024 * 1024,      # safe on v5e/v6e/v7x
        ),
        cost_estimate=pl.CostEstimate(
            flops=flops, transcendentals=0, bytes_accessed=bytes_accessed),
    )(x_p, w1_p, b1_p, w2_p, b2_p)

    # Slice off batch / output-lane padding (padded lanes are exactly 0).
    return out[:B, :d_out]


def init_params(key, d_in, hidden, d_out):
    """Deterministic init mimicking torch.nn.Linear (U(-1/sqrt(fan_in), +))."""
    k1, k2, k3, k4 = jax.random.split(key, 4)
    bound1 = 1.0 / (d_in ** 0.5)
    bound2 = 1.0 / (hidden ** 0.5)
    w1 = jax.random.uniform(k1, (d_in, hidden), jnp.float32, -bound1, bound1)
    b1 = jax.random.uniform(k2, (hidden,), jnp.float32, -bound1, bound1)
    w2 = jax.random.uniform(k3, (hidden, d_out), jnp.float32, -bound2, bound2)
    b2 = jax.random.uniform(k4, (d_out,), jnp.float32, -bound2, bound2)
    return w1, b1, w2, b2


if __name__ == "__main__":
    key = jax.random.PRNGKey(0)
    kx, kp = jax.random.split(key)

    # Small shapes consistent with the module: batch=32, 1x16x16 images
    # -> input_shape=256, hidden_units=32, output_shape=10.
    B, C, H, W = 32, 1, 16, 16
    d_in = C * H * W
    hidden = 32
    d_out = 10

    x = jax.random.normal(kx, (B, C, H, W), jnp.float32)
    w1, b1, w2, b2 = init_params(kp, d_in, hidden, d_out)

    # tile_b=16 -> 2 grid steps; exercises the batch pipeline at small B.
    out = fashion_mnist_model_v1(x, w1, b1, w2, b2, tile_b=16)
    out = jax.block_until_ready(out)

    # References.
    x_flat = x.reshape(B, d_in)
    # (a) bf16-operand / f32-accumulate reference (matches kernel arithmetic).
    xb = x_flat.astype(jnp.bfloat16)
    w1b = w1.astype(jnp.bfloat16)
    w2b = w2.astype(jnp.bfloat16)
    h_ref = jnp.maximum(
        jnp.dot(xb, w1b, preferred_element_type=jnp.float32) + b1, 0.0)
    ref_bf16 = jnp.maximum(
        jnp.dot(h_ref.astype(jnp.bfloat16), w2b,
                preferred_element_type=jnp.float32) + b2, 0.0)
    # (b) pure-f32 reference (loose tolerance covers bf16 operand rounding).
    ref_f32 = jnp.maximum(
        jnp.maximum(x_flat @ w1 + b1, 0.0) @ w2 + b2, 0.0)

    assert out.shape == (B, d_out)
    assert jnp.allclose(out, ref_bf16, atol=1e-3, rtol=1e-3)
    assert jnp.allclose(out, ref_f32, atol=3e-2, rtol=3e-2)

    print("KERNEL_OK")
</pallas_src>

<mosaic_0001>
module attributes {stable_mosaic.version = 11 : i64} {
  func.func @_mlp_kernel(%arg0: i32, %arg1: memref<16x256xbf16, #tpu.memory_space<vmem>>, %arg2: memref<256x128xbf16, #tpu.memory_space<vmem>>, %arg3: memref<1x128xf32, #tpu.memory_space<vmem>>, %arg4: memref<128x128xbf16, #tpu.memory_space<vmem>>, %arg5: memref<1x128xf32, #tpu.memory_space<vmem>>, %arg6: memref<16x128xf32, #tpu.memory_space<vmem>>) attributes {dimension_semantics = [#tpu.dimension_semantics<parallel>], iteration_bounds = array<i64: 2>, scalar_prefetch = 0 : i64, scratch_operands = 0 : i64, tpu.core_type = #tpu.core_type<tc>, window_params = [{transform_indices = @transform_0, window_bounds = array<i64: 16, 256>}, {pipeline_mode = #tpu.pipeline_mode<synchronous>, transform_indices = @transform_1, window_bounds = array<i64: 256, 128>}, {pipeline_mode = #tpu.pipeline_mode<synchronous>, transform_indices = @transform_2, window_bounds = array<i64: 1, 128>}, {pipeline_mode = #tpu.pipeline_mode<synchronous>, transform_indices = @transform_3, window_bounds = array<i64: 128, 128>}, {pipeline_mode = #tpu.pipeline_mode<synchronous>, transform_indices = @transform_4, window_bounds = array<i64: 1, 128>}, {transform_indices = @transform_5, window_bounds = array<i64: 16, 128>}]} {
    %c0 = arith.constant 0 : index
    %c0_0 = arith.constant 0 : index
    %0 = vector.load %arg1[%c0, %c0_0] : memref<16x256xbf16, #tpu.memory_space<vmem>>, vector<16x256xbf16>
    %c0_1 = arith.constant 0 : index
    %c0_2 = arith.constant 0 : index
    %1 = vector.load %arg2[%c0_1, %c0_2] : memref<256x128xbf16, #tpu.memory_space<vmem>>, vector<256x128xbf16>
    %cst = arith.constant dense<0.000000e+00> : vector<16x128xf32>
    %2 = tpu.matmul %0, %1, %cst {dimension_numbers = #tpu.dot_dimension_numbers<[1], [0], [0], [1], [0, 0, 1, 1], [], []>} : vector<16x256xbf16>, vector<256x128xbf16>, vector<16x128xf32> -> vector<16x128xf32>
    %c0_3 = arith.constant 0 : index
    %c0_4 = arith.constant 0 : index
    %3 = vector.load %arg3[%c0_3, %c0_4] : memref<1x128xf32, #tpu.memory_space<vmem>>, vector<1x128xf32>
    %4 = vector.broadcast %3 : vector<1x128xf32> to vector<16x128xf32>
    %5 = arith.addf %2, %4 : vector<16x128xf32>
    %cst_5 = arith.constant 0.000000e+00 : f32
    %6 = vector.broadcast %cst_5 : f32 to vector<16x128xf32>
    %7 = arith.maximumf %5, %6 : vector<16x128xf32>
    %8 = arith.truncf %7 : vector<16x128xf32> to vector<16x128xbf16>
    %c0_6 = arith.constant 0 : index
    %c0_7 = arith.constant 0 : index
    %9 = vector.load %arg4[%c0_6, %c0_7] : memref<128x128xbf16, #tpu.memory_space<vmem>>, vector<128x128xbf16>
    %cst_8 = arith.constant dense<0.000000e+00> : vector<16x128xf32>
    %10 = tpu.matmul %8, %9, %cst_8 {dimension_numbers = #tpu.dot_dimension_numbers<[1], [0], [0], [1], [0, 0, 1, 1], [], []>} : vector<16x128xbf16>, vector<128x128xbf16>, vector<16x128xf32> -> vector<16x128xf32>
    %c0_9 = arith.constant 0 : index
    %c0_10 = arith.constant 0 : index
    %11 = vector.load %arg5[%c0_9, %c0_10] : memref<1x128xf32, #tpu.memory_space<vmem>>, vector<1x128xf32>
    %12 = vector.broadcast %11 : vector<1x128xf32> to vector<16x128xf32>
    %13 = arith.addf %10, %12 : vector<16x128xf32>
    %cst_11 = arith.constant 0.000000e+00 : f32
    %14 = vector.broadcast %cst_11 : f32 to vector<16x128xf32>
    %15 = arith.maximumf %13, %14 : vector<16x128xf32>
    %c0_12 = arith.constant 0 : index
    %c0_13 = arith.constant 0 : index
    %16 = vector.load %arg6[%c0_12, %c0_13] : memref<16x128xf32, #tpu.memory_space<vmem>>, vector<16x128xf32>
    tpu.vector_store %arg6[%c0_12, %c0_13], %15 {strides = array<i32>} : memref<16x128xf32, #tpu.memory_space<vmem>>, vector<16x128xf32>,
    return
  }
  func.func @transform_0(%arg0: i32) -> (i32, i32) {
    %c0_i32 = arith.constant 0 : i32
    %c0_i32_0 = arith.constant 0 : i32
    return %arg0, %c0_i32 : i32, i32
  }
  func.func @transform_1(%arg0: i32) -> (i32, i32) {
    %c0_i32 = arith.constant 0 : i32
    %c0_i32_0 = arith.constant 0 : i32
    %c0_i32_1 = arith.constant 0 : i32
    return %c0_i32, %c0_i32_0 : i32, i32
  }
  func.func @transform_2(%arg0: i32) -> (i32, i32) {
    %c0_i32 = arith.constant 0 : i32
    %c0_i32_0 = arith.constant 0 : i32
    %c0_i32_1 = arith.constant 0 : i32
    return %c0_i32, %c0_i32_0 : i32, i32
  }
  func.func @transform_3(%arg0: i32) -> (i32, i32) {
    %c0_i32 = arith.constant 0 : i32
    %c0_i32_0 = arith.constant 0 : i32
    %c0_i32_1 = arith.constant 0 : i32
    return %c0_i32, %c0_i32_0 : i32, i32
  }
  func.func @transform_4(%arg0: i32) -> (i32, i32) {
    %c0_i32 = arith.constant 0 : i32
    %c0_i32_0 = arith.constant 0 : i32
    %c0_i32_1 = arith.constant 0 : i32
    return %c0_i32, %c0_i32_0 : i32, i32
  }
  func.func @transform_5(%arg0: i32) -> (i32, i32) {
    %c0_i32 = arith.constant 0 : i32
    %c0_i32_0 = arith.constant 0 : i32
    return %arg0, %c0_i32 : i32, i32
  }
}

</mosaic_0001>

<bundles_post_ra>
// kernel: tpu_custom_call.1
= control target key start
LH: loop header
LB: loop body
LE: loop exit
PB: predicated region body
PF: predicated region fallthrough
CT: control target
= control target key end

     0   :  { %10 = vsyncpa [#allocation3], 0  ;;  %s1340_s0 = inlined_call_operand.hbm [shape: bf16[32,256], index: 0, kind: input, shape index: {}]   ;;  %s1341_s1 = inlined_call_operand.hbm [shape: bf16[256,128], index: 1, kind: input, shape index: {}]   ;;  %s1342_s2 = inlined_call_operand.vmem [shape: f32[1,128], index: 2, kind: input, shape index: {}]   ;;  %s1343_s3 = inlined_call_operand.hbm [shape: bf16[128,128], index: 3, kind: input, shape index: {}]   ;;  %s1344_s4 = inlined_call_operand.vmem [shape: f32[1,128], index: 4, kind: input, shape index: {}]   ;;  %s1345_s5 = inlined_call_operand.hbm [shape: f32[32,128], index: 5, kind: output, shape index: {}]  }
   0x1   :  { %12 = vsyncpa [#allocation3 + $0x1], 0 }
   0x2   :  { %13 = vsyncpa [#allocation6], 0 }
   0x3   :  { %14 = vsyncpa [#allocation4], 0 }
   0x4   :  { %16 = vsyncpa [#allocation4 + $0x1], 0  ;;  %s1092_s18 = smov 0   ;;  %s1094_s19 = smov 0  }
   0x5   :  { %s1096_s20 = smov 0   ;;  %s1098_s21 = smov 0  }
   0x6 LB: > { %s1113_s22 = sadd.s32 4294967295, %s1048_s21   ;;  %s689_s23 = sadd.s32 4294967294, %s1048_s21   ;;  %s1048_s21 = sphi %s1098_s21, %s1365_s21   ;;  %s1044_s20 = sphi %s1096_s20, %s1364_s20   ;;  %s1040_s19 = sphi %s1094_s19, %s1363_s19   ;;  %s1036_s18 = sphi %s1092_s18, %s1362_s18  }
   0x7   : > { %p42_p0 = scmp.ne.s32.totalorder %s1040_s19, %s1036_s18  ;;  %p1346_p1 = scmp.eq.s32.totalorder %s1113_s22, 0 }
   0x8   : > { %p156_p3 = scmp.eq.s32.totalorder %s689_s23, 1  ;;  %p690_p5 = scmp.ge.s32.totalorder %s1048_s21, 1 }
   0x9   : > { %p1122_p4 = por %p1346_p1, %p42_p0  ;;  %p163_p7 = scmp.lt.s32.totalorder %s1048_s21, 3 }
   0xa   : > { %p1127_p6 = por %p156_p3, %p42_p0  ;;  %s1050_s27 = smov [#allocation5]  }
   0xb   : > { %s1349_s24 = scalar_select %p1122_p4, 1, 0 }
   0xc   : > { %s1350_s25 = scalar_select %p1127_p6, 1, 0 }
   0xd   : > { %p1132_p8 = pnand %p690_p5, %p163_p7  ;;  %s175_s28 = sshll.u32 %s1050_s27, 4  ;;  %s1136_s28 = int_to_ptr.vmem [resolvable:$true] %s175_s28 }
   0xe   : > { %s1051_s30 = smov [#allocation7]   ;;  %s892_s9 = scalar_lea.hbm %s1341_s1, 2048 }
   0xf   : > { %p802_p9 = pneg %p1132_p8  ;;  %s191_s6 = sshll.u32 %s1051_s30, 4  ;;  %s1147_s6 = int_to_ptr.vmem [resolvable:$true] %s191_s6 }
  0x10   : > { %p893_p12 = scmp.ne.s32.totalorder %s1341_s1, %s892_s9  ;;  %p899_p5 = scmp.lt.u32.totalorder %s892_s9, %s1341_s1 }
  0x11   : > { %p1143_p11 = pnand %p802_p9, %p1346_p1 }
  0x13   : > { %p894_p13 = pneg %p1143_p11 }
  0x15   : > { %p895_p0 = pnand %p894_p13, %p893_p12 }
  0x17   : > { %p896_p3 = pneg %p895_p0 }
  0x19   : > { %p901_p7 = pnand %p899_p5, %p896_p3 }
  0x1b   : > { %904 = shalt.err (!%p901_p7)
}
  0x1c   : > { %s905_s14 = scalar_lea.vmem %s1136_s28, 2048  ;;  %p913_p2 = scmp.lt.s32.totalorder %s1136_s28, %s1136_s28 }
  0x1d   : > { %p906_p9 = scmp.ne.s32.totalorder %s1136_s28, %s905_s14  ;;  %p914_p12 = scmp.lt.s32.totalorder %s905_s14, %s905_s14 }
  0x1f   : > { %p908_p10 = pnand %p906_p9, %p894_p13  ;;  %p915_p0 = por %p914_p12, %p913_p2 }
  0x21   : > { %p909_p1 = pneg %p908_p10 }
  0x23   : > { %p916_p6 = pnand %p915_p0, %p909_p1 }
  0x25   : > { %919 = shalt.err (!%p916_p6)
}
  0x26   : > { %s1052_s15 = smov 64   ;;  %s1053_s16 = smov 4  }
  0x27   : > { %805 = dma.hbm_to_vmem [thread:$0]  (!%p1143_p11), %s1341_s1, 2048, %s1136_s28, [#allocation6], %s1052_s15, %s1052_s15, %s1053_s16  }
  0x28   : > { %s920_s7 = scalar_lea.hbm %s1343_s3, 1024 }
  0x29   : > { %p921_p2 = scmp.ne.s32.totalorder %s1343_s3, %s920_s7  ;;  %p927_p10 = scmp.lt.u32.totalorder %s920_s7, %s1343_s3 }
  0x2b   : > { %p923_p1 = pnand %p921_p2, %p894_p13 }
  0x2d   : > { %p924_p6 = pneg %p923_p1 }
  0x2f   : > { %p929_p3 = pnand %p927_p10, %p924_p6 }
  0x31   : > { %932 = shalt.err (!%p929_p3)
}
  0x32   : > { %s933_s28 = scalar_lea.vmem %s1147_s6, 1024  ;;  %p941_p12 = scmp.lt.s32.totalorder %s1147_s6, %s1147_s6 }
  0x33   : > { %p934_p5 = scmp.ne.s32.totalorder %s1147_s6, %s933_s28  ;;  %p942_p0 = scmp.lt.s32.totalorder %s933_s28, %s933_s28 }
  0x35   : > { %p936_p7 = pnand %p934_p5, %p894_p13  ;;  %p943_p2 = por %p942_p0, %p941_p12 }
  0x37   : > { %p937_p9 = pneg %p936_p7 }
  0x39   : > { %p944_p1 = pnand %p943_p2, %p937_p9 }
  0x3b   : > { %947 = shalt.err (!%p944_p1)
}
  0x3c   : > { %808 = dma.hbm_to_vmem [thread:$0]  (!%p1143_p11), %s1343_s3, 1024, %s1147_s6, [#allocation6], %s1052_s15, %s1052_s15, %s1053_s16  }
  0x3d   : > { %s1202_s14 = sadd.s32 1, %s1048_s21   ;;  %s29_s29 = sadd.s32 1, %s1044_s20 }
  0x3e   : > { %s26_s17 = ssub.s32 %s1048_s21, %s1202_s14  ;;  %p36_p13 = scmp.ne.s32.totalorder %s1044_s20, %s1040_s19 }
  0x3f   : > { %p27_p6 = scmp.eq.s32.totalorder %s26_s17, 0  ;;  %p37_p10 = scmp.eq.s32.totalorder %s1048_s21, 0 }
  0x40   : > { %p1353_p3 = scmp.eq.s32.totalorder %s1113_s22, 1  ;;  %p819_p7 = scmp.lt.s32.totalorder %s1048_s21, 2 }
  0x41   : > { %s1218_s27 = scalar_select %p27_p6, %s1044_s20, %s29_s29  }
  0x42   : > { %p1212_p5 = por %p1353_p3, %p36_p13  ;;  %p38_p9 = por %p37_p10, %p36_p13 }
  0x43   : > { %s208_s30 = sand.u32 1, %s1044_s20   ;;  %s737_s6 = sshll.u32 %s1048_s21, 8 }
  0x44   : > { %s1354_s23 = scalar_select %p1212_p5, 1, 0 }
  0x45   : > { %s694_s7 = sshll.u32 %s208_s30, 4  ;;  %s1225_s8 = scalar_lea.hbm %s1340_s0, %s737_s6 }
  0x46   : > { %s212_s9 = scalar_lea.vmem [#allocation2], %s694_s7  ;;  %p1229_p11 = pnand %p819_p7, %p38_p9 }
  0x47   : > { %s220_s10 = sshll.u32 %s212_s9, 4  ;;  %s1233_s28 = scalar_lea.sflag [#allocation3], %s208_s30  ;;  %s1227_s10 = int_to_ptr.vmem [resolvable:$true] %s220_s10 }
  0x48   : > { %s948_s12 = scalar_lea.hbm %s1225_s8, 256  ;;  %p950_p0 = pneg %p1229_p11 }
  0x49   : > { %p949_p12 = scmp.ne.s32.totalorder %s1225_s8, %s948_s12  ;;  %s953_s17 = scalar_lea.hbm %s1340_s0, 512 }
  0x4a   : > { %p954_p13 = scmp.lt.u32.totalorder %s1225_s8, %s1340_s0  ;;  %p955_p6 = scmp.lt.u32.totalorder %s953_s17, %s948_s12 }
  0x4b   : > { %p951_p2 = pnand %p950_p0, %p949_p12  ;;  %p957_p3 = scmp.lt.u32.totalorder %s948_s12, %s1225_s8 }
  0x4c   : > { %p956_p10 = por %p955_p6, %p954_p13 }
  0x4d   : > { %p952_p1 = pneg %p951_p2 }
  0x4e   : > { %p958_p7 = por %p957_p3, %p956_p10 }
  0x50   : > { %p959_p9 = pnand %p958_p7, %p952_p1 }
  0x52   : > { %962 = shalt.err (!%p959_p9)
}
  0x53   : > { %s963_s30 = scalar_lea.vmem %s1227_s10, 256  ;;  %s1054_s15 = smov [#allocation2]  }
  0x54   : > { %p964_p12 = scmp.ne.s32.totalorder %s1227_s10, %s963_s30  ;;  %s968_s16 = sshll.u32 %s1054_s15, 4  ;;  %s969_s16 = int_to_ptr.vmem [resolvable:$false] %s968_s16 }
  0x55   : > { %s970_s9 = scalar_lea.vmem %s969_s16, 512  ;;  %p971_p4 = scmp.lt.s32.totalorder %s1227_s10, %s969_s16 }
  0x56   : > { %p966_p2 = pnand %p964_p12, %p950_p0  ;;  %p972_p13 = scmp.lt.s32.totalorder %s970_s9, %s963_s30 }
  0x58   : > { %p967_p5 = pneg %p966_p2  ;;  %p973_p6 = por %p972_p13, %p971_p4 }
  0x5a   : > { %p974_p10 = pnand %p973_p6, %p967_p5 }
  0x5c   : > { %977 = shalt.err (!%p974_p10)
}
  0x5d   : > { %s1055_s12 = smov 128   ;;  %s1056_s13 = smov 8  }
  0x5e   : > { %812 = dma.hbm_to_vmem [thread:$0]  (!%p1229_p11), %s1225_s8, 256, %s1227_s10, %s1233_s28, %s1055_s12, %s1055_s12, %s1056_s13  }
  0x5f   : > { %232 = sbr.rel (%p1132_p8) target bundleno = 595 (0x253), region = 40  ;;  %s1264_s29 = sand.u32 (!%p1132_p8), 1, %s1040_s19  }
  0x60   : > { %s699_s17 = sshll.u32 (!%p1132_p8), %s1264_s29, 4  ;;  %s235_s7 = scalar_lea.sflag (!%p1132_p8), [#allocation3], %s1264_s29 }
  0x61   : > { %s1270_s6 = scalar_lea.vmem (!%p1132_p8), [#allocation2], %s699_s17  ;;  %p1356_p4 = scmp.ne.s32.totalorder (!%p1132_p8), %s1349_s24, 0 }
  0x66   : > { %1023 = dma.done.wait (%p1356_p4), %s235_s7, 256  }
  0x67   : > { %1025 = vsyncadd (%p1356_p4), %s235_s7, 4294967040  ;;  %p1357_p5 = scmp.eq.s32.totalorder %s1113_s22, 0 }
  0x69   : > { %1027 = dma.done.wait (%p1357_p5), [#allocation6], 3072   ;;  %p1358_p8 = pmov %p1357_p5 }
  0x6a   : > { %v1057_v0 = vmov 0.0   ;;  %v865_v1 = vld [vmem:[#allocation5 + $0x40] sm:$0xff]   ;;  %v867_v3 = vld [vmem:[#allocation5 + $0x48] sm:$0xff]   ;;  %v869_v5 = vld [vmem:[#allocation5 + $0x50] sm:$0xff]   ;;  %vm1058_vm0 = vmmov 0   ;;  %s272_s11 = scalar_lea.vmem [#allocation8], %s699_s17 }
  0x6b   : > { %1029 = vsyncadd (%p1358_p8), [#allocation6], 4294964224  ;;  %770 = vmatprep.subr.bf16.mxu1 %v1057_v0  ;;  %v866_v2 = vld [vmem:[#allocation5] sm:$0xff]   ;;  %739 = vmatprep.subr.bf16.mxu0 %v865_v1  ;;  %v868_v4 = vld [vmem:[#allocation5 + $0x8] sm:$0xff]   ;;  %s597_s28 = sshll.u32 %s272_s11, 4  ;;  %s738_s30 = sshll.u32 %s1113_s22, 8  ;;  %s1291_s28 = int_to_ptr.vmem [resolvable:$true] %s597_s28 }
  0x6c   : > { %740 = vmatpush3.bf16.msra.mxu0 %v866_v2  ;;  %v870_v6 = vld [vmem:[#allocation5 + $0x10] sm:$0xff]   ;;  %v871_v7 = vld [vmem:[#allocation5 + $0x58] sm:$0xff]   ;;  %v873_v9 = vld [vmem:[#allocation5 + $0x60] sm:$0xff]   ;;  %786 = vmatprep.mubr.msk.bf16.mxu1 %vm1058_vm0, %v1057_v0  ;;  %s1296_s9 = scalar_lea.hbm %s1345_s5, %s738_s30  ;;  %s584_s12 = scalar_lea.sflag [#allocation4], %s1264_s29 }
  0x6d   : > { %741 = vmatprep.subr.bf16.mxu0 %v867_v3  ;;  %v872_v8 = vld [vmem:[#allocation5 + $0x18] sm:$0xff]   ;;  %v874_v10 = vld [vmem:[#allocation5 + $0x20] sm:$0xff]   ;;  %v875_v11 = vld [vmem:[#allocation5 + $0x68] sm:$0xff]   ;;  %s978_s13 = scalar_lea.vmem %s1291_s28, 256  ;;  %p1359_p0 = scmp.ne.s32.totalorder %s1354_s23, 0 }
  0x6e   : > { %v876_v12 = vld [vmem:[#allocation5 + $0x28] sm:$0xff]   ;;  %v884_v14 = vld [vmem:[#allocation7] sm:$0xff]   ;;  %v877_v15 = vld [vmem:[#allocation5 + $0x70] sm:$0xff]   ;;  %p979_p11 = scmp.ne.s32.totalorder %s1291_s28, %s978_s13  ;;  %s1059_s22 = smov [#allocation8]  }
  0x6f   : > { %v883_v13 = vld [vmem:[%s1270_s6 + $0x4] ss:$8 sps:$4 sm:$0xff]   ;;  %771 = vmatpush3.bf16.msra.mxu1 %v884_v14  ;;  %v881_v22 = vld [vmem:[%s1270_s6] ss:$8 sps:$4 sm:$0xff]   ;;  %s982_s17 = sshll.u32 %s1059_s22, 4  ;;  %s983_s17 = int_to_ptr.vmem [resolvable:$false] %s982_s17 }
  0x70   : > { %742 = vmatpush3.bf16.msra.mxu0 %v868_v4  ;;  %455 = vmatprep.mubr.bf16.mxu0 %v883_v13  ;;  %v885_v16 = vld [vmem:[#allocation7 + $0x8] sm:$0xff]   ;;  %v878_v17 = vld [vmem:[#allocation5 + $0x30] sm:$0xff]   ;;  %v879_v18 = vld [vmem:[#allocation5 + $0x78] sm:$0xff]   ;;  %p980_p1 = pnand %p979_p11, %p1359_p0  ;;  %s984_s7 = scalar_lea.vmem %s983_s17, 512 }
  0x71   : > { %743 = vmatprep.subr.bf16.mxu0 %v869_v5  ;;  %772 = vmatprep.subr.bf16.mxu1 %v1057_v0  ;;  %v886_v19 = vld [vmem:[#allocation7 + $0x10] sm:$0xff]   ;;  %v880_v20 = vld [vmem:[#allocation5 + $0x38] sm:$0xff]   ;;  %v888_v23 = vld [vmem:[#allocation7 + $0x20] sm:$0xff]   ;;  %p985_p7 = scmp.lt.s32.totalorder %s1291_s28, %s983_s17  ;;  %p986_p9 = scmp.lt.s32.totalorder %s984_s7, %s978_s13 }
  0x72   : > { %v887_v21 = vld [vmem:[#allocation7 + $0x18] sm:$0xff]   ;;  %v889_v24 = vld [vmem:[#allocation7 + $0x28] sm:$0xff]   ;;  %v890_v25 = vld [vmem:[#allocation7 + $0x30] sm:$0xff]   ;;  %p981_p3 = pneg %p980_p1 }
  0x73   : > { %773 = vmatpush3.bf16.msra.mxu1 %v885_v16  ;;  %v891_v26 = vld [vmem:[#allocation7 + $0x38] sm:$0xff]   ;;  %v703_v28 = vld [vmem:[%s1342_s2] ss:$0 sm:$0xff]  ;;  %p987_p12 = por %p986_p9, %p985_p7 }
  0x74   : > { %744 = vmatpush3.bf16.msra.mxu0 %v870_v6  ;;  %774 = vmatprep.subr.bf16.mxu1 %v1057_v0  ;;  %v722_v39 = vld [vmem:[%s1344_s4] ss:$0 sm:$0xff] }
  0x75   : > { %745 = vmatprep.subr.bf16.mxu0 %v871_v7  ;;  %p988_p2 = pnand %p987_p12, %p981_p3 }
  0x77   : > { %775 = vmatpush3.bf16.msra.mxu1 %v886_v19 }
  0x78   : > { %746 = vmatpush3.bf16.msra.mxu0 %v872_v8  ;;  %776 = vmatprep.subr.bf16.mxu1 %v1057_v0 }
  0x79   : > { %747 = vmatprep.subr.bf16.mxu0 %v873_v9 }
  0x7b   : > { %777 = vmatpush3.bf16.msra.mxu1 %v887_v21 }
  0x7c   : > { %748 = vmatpush3.bf16.msra.mxu0 %v874_v10  ;;  %778 = vmatprep.subr.bf16.mxu1 %v1057_v0 }
  0x7d   : > { %749 = vmatprep.subr.bf16.mxu0 %v875_v11 }
  0x7f   : > { %779 = vmatpush3.bf16.msra.mxu1 %v888_v23 }
  0x80   : > { %750 = vmatpush3.bf16.msra.mxu0 %v876_v12  ;;  %780 = vmatprep.subr.bf16.mxu1 %v1057_v0 }
  0x81   : > { %751 = vmatprep.subr.bf16.mxu0 %v877_v15 }
  0x83   : > { %781 = vmatpush3.bf16.msra.mxu1 %v889_v24 }
  0x84   : > { %752 = vmatpush3.bf16.msra.mxu0 %v878_v17  ;;  %782 = vmatprep.subr.bf16.mxu1 %v1057_v0 }
  0x85   : > { %753 = vmatprep.subr.bf16.mxu0 %v879_v18 }
  0x87   : > { %783 = vmatpush3.bf16.msra.mxu1 %v890_v25 }
  0x88   : > { %754 = vmatpush3.bf16.msra.mxu0 %v880_v20  ;;  %784 = vmatprep.subr.bf16.mxu1 %v1057_v0 }
  0x8b   : > { %456 = vmatmul.mubr.bf16.vlgmr.msra.gmra.mrb[0].mxu0 %v881_v22  ;;  %785 = vmatpush3.bf16.msra.mxu1 %v891_v26 }
 0x15e   : > { %v755_v27 = vpop.f32.mrb[0].mxu0 }
 0x15f   : > { %v756_v29 = vpop.f32.mrb[1].mxu0 }
 0x160   : > { %v757_v30 = vadd.f32 %v756_v29, %v755_v27  ;;  %v758_v31 = vpop.f32.mrb[2].mxu0 }
 0x161   : > { %v759_v32 = vpop.f32.mrb[3].mxu0 }
 0x162   : > { %v458_v33 = vadd.f32 %v757_v30, %v703_v28  ;;  %v760_v34 = vadd.f32 %v759_v32, %v758_v31 }
 0x164   : > { %v461_v35 = vadd.f32 %v760_v34, %v703_v28  ;;  %v464_v36 = vmax.f32 %v458_v33, 0.0 }
 0x166   : > { %v465_v37 = vmax.f32 %v461_v35, 0.0 }
 0x168   : > { %v466_v38 = vpack.c.bf16 %v465_v37, %v464_v36 }
 0x16a   : > { %787 = vmatmul.mubr.bf16.vlgmr.msra.gmra.mrb[0].mxu1 %v466_v38 }
 0x23d   : > { %v572_v40 = vpop.f32.mrb[0].mxu1 }
 0x23e   : > { %v573_v41 = vadd.f32 %v722_v39, %v572_v40  ;;  %v788_v42 = vpop.f32.mrb[1].mxu1 }
 0x23f   : > { %v575_v43 = vpop.f32.mrb[2].mxu1 }
 0x240   : > { %v579_v44 = vmax.f32 %v573_v41, 0.0  ;;  %v576_v45 = vadd.f32 %v722_v39, %v575_v43  ;;  %v789_v46 = vpop.f32.mrb[3].mxu1 }
 0x242   : > { %581 = vst [vmem:[%s272_s11] sm:$0xff] %v579_v44  ;;  %v580_v47 = vmax.f32 %v576_v45, 0.0 }
 0x244   : > { %582 = vst [vmem:[%s272_s11 + $0x8] sm:$0xff] %v580_v47 }
 0x245   : > { %991 = shalt.err (!%p988_p2)
}
 0x246   : > { %s992_s6 = scalar_lea.hbm %s1296_s9, 256  ;;  %s996_s8 = scalar_lea.hbm %s1345_s5, 512 }
 0x247   : > { %p993_p13 = scmp.ne.s32.totalorder %s1296_s9, %s992_s6  ;;  %p997_p4 = scmp.lt.u32.totalorder %s1296_s9, %s1345_s5 }
 0x248   : > { %p998_p5 = scmp.lt.u32.totalorder %s996_s8, %s992_s6  ;;  %p1000_p11 = scmp.lt.u32.totalorder %s992_s6, %s1296_s9 }
 0x249   : > { %p994_p6 = pnand %p993_p13, %p1359_p0 }
 0x24a   : > { %p999_p8 = por %p998_p5, %p997_p4 }
 0x24b   : > { %p995_p10 = pneg %p994_p6 }
 0x24c   : > { %p1001_p1 = por %p1000_p11, %p999_p8 }
 0x24e   : > { %p1002_p3 = pnand %p1001_p1, %p995_p10 }
 0x250   : > { %1005 = shalt.err (!%p1002_p3)
}
 0x251   : > { %s1060_s30 = smov 128   ;;  %s1061_s15 = smov 8  }
 0x252   : > { %800 = dma.vmem_to_hbm [thread:$0]  (%p1359_p0), %s1291_s28, 256, %s1296_s9, %s584_s12, %s1060_s30, %s1060_s30, %s1061_s15  }
 0x253 PF: > { %s612_s16 = sand.u32 1, %s1036_s18   ;;  %p1360_p7 = scmp.ne.s32.totalorder %s1350_s25, 0 }
 0x254   : > { %p1361_p9 = scmp.ge.s32.totalorder %s1048_s21, 2  ;;  %s613_s13 = scalar_lea.sflag [#allocation4], %s612_s16 }
 0x256   : > { %p814_p12 = pnand %p1361_p9, %p1360_p7 }
 0x258   : > { %1031 = dma.done.wait (!%p814_p12), %s613_s13, 256  }
 0x259   : > { %1033 = vsyncadd (!%p814_p12), %s613_s13, 4294967040  ;;  %p19_p2 = scmp.ge.s32.totalorder %s1202_s14, 4   ;;  %s1362_s18 = smov %s1040_s19 }
 0x25a   : > { %s1363_s19 = smov %s1044_s20  ;;  %s1364_s20 = smov %s1218_s27 }
 0x25b   : > { %s1365_s21 = smov %s1202_s14  ;;  %21 = sbr.rel (!%p19_p2) target bundleno = 6 (0x6), region = 93 }
 0x262   :  { %618 = vsyncpa [#allocation3], 1 }
 0x263   :  { %620 = vsyncpa [#allocation3 + $0x1], 1 }
 0x264   :  { %621 = vsyncpa [#allocation6], 1 }
 0x265   :  { %622 = vsyncpa [#allocation4], 1 }
 0x266   :  { %624 = vsyncpa [#allocation4 + $0x1], 1 }

</bundles_post_ra>
